<compile_context>
chip_gen: v5e
topology: v5e:2x2
jax: 0.10.0
libtpu: 0.0.40
codegen_flags: <defaults>
</compile_context>

<pallas_src>
import functools

import jax
import jax.numpy as jnp
from jax.experimental import pallas as pl
from jax.experimental.pallas import tpu as pltpu


def _custom_norm_kernel(x_ref, gamma_ref, beta_ref, o_ref, *, epsilon, tile_f):
    j = pl.program_id(0)
    start = pl.multiple_of(j * tile_f, tile_f)

    x = x_ref[...]                                    # (N, TF), native dtype
    n = x.shape[0]

    # Reduction in f32 regardless of input dtype.
    xf = x.astype(jnp.float32)
    mean = jnp.mean(xf, axis=0, keepdims=True)        # (1, TF)
    diff = xf - mean
    # torch.var default is unbiased (divides by N-1); N == 1 -> inf/nan, same
    # as torch.
    var = jnp.sum(diff * diff, axis=0, keepdims=True) / jnp.float32(n - 1)
    inv_std = jax.lax.rsqrt(var + jnp.float32(epsilon))

    # gamma/beta are resident full-(1, F) blocks; slice the current tile.
    gamma = gamma_ref[:, pl.ds(start, tile_f)].astype(jnp.float32)
    beta = beta_ref[:, pl.ds(start, tile_f)].astype(jnp.float32)

    # y = gamma*(x-mean)*inv_std + beta  ==  x*scale + shift
    scale = gamma * inv_std                           # (1, TF)
    shift = beta - mean * scale                       # (1, TF)

    if o_ref.dtype == jnp.float32:
        y = xf * scale + shift
    else:
        # Native-dtype (e.g. bf16) elementwise pass: avoids holding a second
        # full f32 copy of the slab for the write.
        y = x * scale.astype(x.dtype) + shift.astype(x.dtype)
    o_ref[...] = y.astype(o_ref.dtype)


def _pick_tile_f(n, f, itemsize, vmem_budget_bytes=40 << 20):
    """Largest 128-multiple feature tile whose pipelined footprint fits budget."""
    if f % 128 != 0:
        # Last block dim must be a multiple of 128 or the full axis.
        return f
    # Per feature lane: double-buffered input + output slabs plus ~2 f32
    # temporaries of the (n, tile_f) slab inside the kernel body.
    bytes_per_lane = n * (4 * itemsize + 2 * 4)
    max_tf = max(128, (vmem_budget_bytes // bytes_per_lane) // 128 * 128)
    tile_f = min(f, max_tf)
    while f % tile_f != 0:            # keep an exact grid
        tile_f -= 128
    # v7x has 2 TensorCores: keep >= 2 grid steps when possible so the
    # "parallel" feature axis can shard across both cores.  Extra cost on
    # v5e/v6e is one ~0.35us grid step -- negligible.
    if tile_f == f and f >= 256 and (f // 2) % 128 == 0:
        tile_f = f // 2
    return tile_f


def custom_norm(x, gamma, beta, epsilon=1e-10, tile_f=None):
    """x: (N, F); gamma, beta: (1, F). Returns (N, F)."""
    n, f = x.shape
    itemsize = jnp.dtype(x.dtype).itemsize
    if tile_f is None:
        tile_f = _pick_tile_f(n, f, itemsize)
    assert tile_f == f or (tile_f % 128 == 0 and f % tile_f == 0), (
        "tile_f must be the full feature axis or a 128-multiple dividing F")
    grid = (pl.cdiv(f, tile_f),)

    # VMEM footprint: 2x double-buffered (N, tile_f) in/out slabs, f32
    # temporaries, resident (1, F) gamma/beta, plus slack.  Raise the scoped
    # VMEM limit beyond the 16/32 MiB defaults if needed, but stay under the
    # v7x 64 MiB physical VMEM.
    est_bytes = (4 * n * tile_f * itemsize      # 2 input + 2 output buffers
                 + 2 * n * tile_f * 4           # f32 temporaries in the body
                 + 4 * f * 4                    # gamma/beta (double-buffered)
                 + (2 << 20))                   # slack
    vmem_limit = int(min(56 << 20, max(32 << 20, est_bytes)))

    kernel = functools.partial(_custom_norm_kernel, epsilon=epsilon,
                               tile_f=tile_f)

    return pl.pallas_call(
        kernel,
        out_shape=jax.ShapeDtypeStruct((n, f), x.dtype),
        grid_spec=pltpu.PrefetchScalarGridSpec(
            num_scalar_prefetch=0,
            grid=grid,
            in_specs=[
                pl.BlockSpec((n, tile_f), lambda j: (0, j)),
                pl.BlockSpec((1, f), lambda j: (0, 0)),   # gamma, resident
                pl.BlockSpec((1, f), lambda j: (0, 0)),   # beta, resident
            ],
            out_specs=pl.BlockSpec((n, tile_f), lambda j: (0, j)),
        ),
        compiler_params=pltpu.CompilerParams(
            dimension_semantics=("parallel",),
            vmem_limit_bytes=vmem_limit,
        ),
    )(x, gamma, beta)


if __name__ == "__main__":
    # Small shapes consistent with the module: x is (batch, num_features).
    batch, num_features = 8, 256

    key = jax.random.PRNGKey(0)
    x = jax.random.normal(key, (batch, num_features), dtype=jnp.float32)

    # Deterministic parameter init, matching nn.Parameter shapes in __init__:
    #   beta  = zeros(1, num_features), gamma = ones(1, num_features)
    beta = jnp.zeros((1, num_features), dtype=jnp.float32)
    gamma = jnp.ones((1, num_features), dtype=jnp.float32)

    out = custom_norm(x, gamma, beta, epsilon=1e-10)
    out = jax.block_until_ready(out)

    # Pure-JAX reference check (unbiased variance, like torch.var default).
    mean = jnp.mean(x, axis=0, keepdims=True)
    var = jnp.sum((x - mean) ** 2, axis=0, keepdims=True) / (batch - 1)
    ref = gamma * (x - mean) / jnp.sqrt(var + 1e-10) + beta
    assert jnp.allclose(out, ref, atol=1e-5, rtol=1e-5), "mismatch vs reference"

    print("KERNEL_OK")
</pallas_src>

<mosaic_0001>
module attributes {stable_mosaic.version = 11 : i64} {
  func.func @_custom_norm_kernel(%arg0: i32, %arg1: memref<8x128xf32, #tpu.memory_space<vmem>>, %arg2: memref<1x256xf32, #tpu.memory_space<vmem>>, %arg3: memref<1x256xf32, #tpu.memory_space<vmem>>, %arg4: memref<8x128xf32, #tpu.memory_space<vmem>>) attributes {dimension_semantics = [#tpu.dimension_semantics<parallel>], iteration_bounds = array<i64: 2>, scalar_prefetch = 0 : i64, scratch_operands = 0 : i64, tpu.core_type = #tpu.core_type<tc>, window_params = [{transform_indices = @transform_0, window_bounds = array<i64: 8, 128>}, {pipeline_mode = #tpu.pipeline_mode<synchronous>, transform_indices = @transform_1, window_bounds = array<i64: 1, 256>}, {pipeline_mode = #tpu.pipeline_mode<synchronous>, transform_indices = @transform_2, window_bounds = array<i64: 1, 256>}, {transform_indices = @transform_3, window_bounds = array<i64: 8, 128>}]} {
    %c128_i32 = arith.constant 128 : i32
    %0 = arith.muli %arg0, %c128_i32 : i32
    %1 = tpu.assume_multiple %0, 128 : i32
    %c0 = arith.constant 0 : index
    %c0_0 = arith.constant 0 : index
    %2 = vector.load %arg1[%c0, %c0_0] : memref<8x128xf32, #tpu.memory_space<vmem>>, vector<8x128xf32>
    %cst = arith.constant dense<0.000000e+00> : vector<128xf32>
    %3 = vector.multi_reduction <add>, %2, %cst [0] : vector<8x128xf32> to vector<128xf32>
    %4 = vector.shape_cast %3 : vector<128xf32> to vector<1x128xf32>
    %cst_1 = arith.constant 8.000000e+00 : f32
    %5 = vector.broadcast %cst_1 : f32 to vector<1x128xf32>
    %6 = arith.divf %4, %5 : vector<1x128xf32>
    %7 = vector.broadcast %6 : vector<1x128xf32> to vector<8x128xf32>
    %8 = arith.subf %2, %7 : vector<8x128xf32>
    %9 = arith.mulf %8, %8 : vector<8x128xf32>
    %cst_2 = arith.constant dense<0.000000e+00> : vector<128xf32>
    %10 = vector.multi_reduction <add>, %9, %cst_2 [0] : vector<8x128xf32> to vector<128xf32>
    %11 = vector.shape_cast %10 : vector<128xf32> to vector<1x128xf32>
    %cst_3 = arith.constant 7.000000e+00 : f32
    %12 = vector.broadcast %cst_3 : f32 to vector<1x128xf32>
    %13 = arith.divf %11, %12 : vector<1x128xf32>
    %cst_4 = arith.constant 1.000000e-10 : f32
    %14 = vector.broadcast %cst_4 : f32 to vector<1x128xf32>
    %15 = arith.addf %13, %14 : vector<1x128xf32>
    %16 = math.rsqrt %15 : vector<1x128xf32>
    %c0_5 = arith.constant 0 : index
    %17 = arith.index_cast %1 : i32 to index
    %18 = vector.load %arg2[%c0_5, %17] : memref<1x256xf32, #tpu.memory_space<vmem>>, vector<1x128xf32>
    %c0_6 = arith.constant 0 : index
    %19 = arith.index_cast %1 : i32 to index
    %20 = vector.load %arg3[%c0_6, %19] : memref<1x256xf32, #tpu.memory_space<vmem>>, vector<1x128xf32>
    %21 = arith.mulf %18, %16 : vector<1x128xf32>
    %22 = arith.mulf %6, %21 : vector<1x128xf32>
    %23 = arith.subf %20, %22 : vector<1x128xf32>
    %24 = vector.broadcast %21 : vector<1x128xf32> to vector<8x128xf32>
    %25 = arith.mulf %2, %24 : vector<8x128xf32>
    %26 = vector.broadcast %23 : vector<1x128xf32> to vector<8x128xf32>
    %27 = arith.addf %25, %26 : vector<8x128xf32>
    %c0_7 = arith.constant 0 : index
    %c0_8 = arith.constant 0 : index
    %28 = vector.load %arg4[%c0_7, %c0_8] : memref<8x128xf32, #tpu.memory_space<vmem>>, vector<8x128xf32>
    tpu.vector_store %arg4[%c0_7, %c0_8], %27 {strides = array<i32>} : memref<8x128xf32, #tpu.memory_space<vmem>>, vector<8x128xf32>,
    return
  }
  func.func @transform_0(%arg0: i32) -> (i32, i32) {
    %c0_i32 = arith.constant 0 : i32
    %c0_i32_0 = arith.constant 0 : i32
    return %c0_i32, %arg0 : i32, i32
  }
  func.func @transform_1(%arg0: i32) -> (i32, i32) {
    %c0_i32 = arith.constant 0 : i32
    %c0_i32_0 = arith.constant 0 : i32
    %c0_i32_1 = arith.constant 0 : i32
    return %c0_i32, %c0_i32_0 : i32, i32
  }
  func.func @transform_2(%arg0: i32) -> (i32, i32) {
    %c0_i32 = arith.constant 0 : i32
    %c0_i32_0 = arith.constant 0 : i32
    %c0_i32_1 = arith.constant 0 : i32
    return %c0_i32, %c0_i32_0 : i32, i32
  }
  func.func @transform_3(%arg0: i32) -> (i32, i32) {
    %c0_i32 = arith.constant 0 : i32
    %c0_i32_0 = arith.constant 0 : i32
    return %c0_i32, %arg0 : i32, i32
  }
}

</mosaic_0001>

<bundles_post_ra>
// kernel: tpu_custom_call.1
= control target key start
LH: loop header
LB: loop body
LE: loop exit
PB: predicated region body
PF: predicated region fallthrough
CT: control target
= control target key end

     0   :  { %8 = vsyncpa [#allocation3], 0  ;;  %s809_s0 = inlined_call_operand.hbm [shape: f32[8,256], index: 0, kind: input, shape index: {}]   ;;  %s810_s1 = inlined_call_operand.hbm [shape: f32[1,256], index: 1, kind: input, shape index: {}]   ;;  %s811_s2 = inlined_call_operand.hbm [shape: f32[1,256], index: 2, kind: input, shape index: {}]   ;;  %s812_s3 = inlined_call_operand.hbm [shape: f32[8,256], index: 3, kind: output, shape index: {}]  }
   0x1   :  { %10 = vsyncpa [#allocation3 + $0x1], 0 }
   0x2   :  { %11 = vsyncpa [#allocation6], 0 }
   0x3   :  { %12 = vsyncpa [#allocation4], 0 }
   0x4   :  { %14 = vsyncpa [#allocation4 + $0x1], 0  ;;  %s663_s12 = smov 0   ;;  %s665_s13 = smov 0  }
   0x5   :  { %s667_s14 = smov 0   ;;  %s669_s15 = smov 0  }
   0x6 LB: > { %s684_s16 = sadd.s32 4294967295, %s637_s15   ;;  %s385_s17 = sadd.s32 4294967294, %s637_s15   ;;  %s637_s15 = sphi %s669_s15, %s822_s15   ;;  %s633_s14 = sphi %s667_s14, %s821_s14   ;;  %s629_s13 = sphi %s665_s13, %s820_s13   ;;  %s625_s12 = sphi %s663_s12, %s819_s12  }
   0x7   : > { %p40_p0 = scmp.ne.s32.totalorder %s629_s13, %s625_s12  ;;  %p41_p1 = scmp.eq.s32.totalorder %s684_s16, 0 }
   0x8   : > { %p106_p2 = scmp.eq.s32.totalorder %s684_s16, 1  ;;  %p112_p3 = scmp.eq.s32.totalorder %s385_s17, 1 }
   0x9   : > { %p693_p4 = por %p41_p1, %p40_p0  ;;  %p386_p5 = scmp.ge.s32.totalorder %s637_s15, 1 }
   0xa   : > { %p698_p6 = por %p112_p3, %p40_p0  ;;  %p119_p7 = scmp.lt.s32.totalorder %s637_s15, 3 }
   0xb   : > { %s131_s22 = sshll.u32 %s810_s1, 4  ;;  %s639_s24 = smov [#allocation5]   ;;  %s132_s22 = int_to_ptr.hbm [resolvable:$true] %s131_s22 }
   0xc   : > { %p706_p8 = pnand %p386_p5, %p119_p7  ;;  %s133_s25 = sshll.u32 %s639_s24, 4  ;;  %s134_s25 = int_to_ptr.vmem [resolvable:$true] %s133_s25 }
   0xd   : > { %s143_s28 = sshll.u32 %s811_s2, 4  ;;  %s640_s29 = smov [#allocation7]   ;;  %s144_s28 = int_to_ptr.hbm [resolvable:$true] %s143_s28 }
   0xe   : > { %p414_p10 = pneg %p706_p8  ;;  %s145_s30 = sshll.u32 %s640_s29, 4  ;;  %s146_s30 = int_to_ptr.vmem [resolvable:$true] %s145_s30 }
   0xf   : > { %s719_s4 = sadd.s32 1, %s637_s15   ;;  %s27_s5 = sadd.s32 1, %s633_s14 }
  0x10   : > { %p415_p11 = pnand %p414_p10, %p41_p1  ;;  %s24_s6 = ssub.s32 %s637_s15, %s719_s4 }
  0x11   : > { %p34_p12 = scmp.ne.s32.totalorder %s633_s14, %s629_s13  ;;  %p25_p13 = scmp.eq.s32.totalorder %s24_s6, 0 }
  0x12   : > { %417 = dma.hbm_to_vmem [thread:$0]  (!%p415_p11), %s132_s22, 32, %s134_s25, [#allocation6]  }
  0x13   : > { %420 = dma.hbm_to_vmem [thread:$0]  (!%p415_p11), %s144_s28, 32, %s146_s30, [#allocation6]  }
  0x14   : > { %p35_p0 = scmp.eq.s32.totalorder %s637_s15, 0  ;;  %p729_p3 = por %p106_p2, %p34_p12 }
  0x15   : > { %p431_p5 = scmp.lt.s32.totalorder %s637_s15, 2  ;;  %s156_s9 = sand.u32 1, %s633_s14  }
  0x16   : > { %s735_s8 = scalar_select %p25_p13, %s633_s14, %s27_s5  }
  0x17   : > { %p36_p7 = por %p35_p0, %p34_p12  ;;  %s390_s10 = sshll.u32 %s156_s9, 3 }
  0x18   : > { %s391_s11 = sshll.u32 %s637_s15, 3  ;;  %s160_s22 = scalar_lea.vmem [#allocation2], %s390_s10 }
  0x19   : > { %s164_s21 = scalar_lea.hbm %s809_s0, %s391_s11  ;;  %s168_s24 = sshll.u32 %s160_s22, 4  ;;  %s169_s24 = int_to_ptr.vmem [resolvable:$true] %s168_s24 }
  0x1a   : > { %s166_s25 = sshll.u32 %s164_s21, 4  ;;  %p742_p2 = pnand %p431_p5, %p36_p7  ;;  %s167_s25 = int_to_ptr.hbm [resolvable:$true] %s166_s25 }
  0x1b   : > { %s157_s27 = scalar_lea.sflag [#allocation3], %s156_s9  ;;  %s537_s28 = sshra.s32 %s167_s25, 4  ;;  %s538_s28 = int_to_ptr.hbm [resolvable:$true] %s537_s28 }
  0x1c   : > { %s539_s29 = scalar_lea.hbm %s538_s28, 8  ;;  %p541_p11 = pneg %p742_p2 }
  0x1d   : > { %p540_p10 = scmp.ne.s32.totalorder %s538_s28, %s539_s29  ;;  %s544_s6 = scalar_lea.hbm %s809_s0, 16 }
  0x1e   : > { %p545_p0 = scmp.lt.s32.totalorder %s538_s28, %s809_s0  ;;  %p546_p5 = scmp.lt.s32.totalorder %s544_s6, %s539_s29 }
  0x1f   : > { %p542_p12 = pnand %p541_p11, %p540_p10 }
  0x20   : > { %p547_p7 = por %p546_p5, %p545_p0 }
  0x21   : > { %p543_p13 = pneg %p542_p12 }
  0x23   : > { %p548_p9 = pnand %p547_p7, %p543_p13 }
  0x25   : > { %551 = shalt.err (!%p548_p9)
}
  0x26   : > { %424 = dma.hbm_to_vmem [thread:$0]  (!%p742_p2), %s167_s25, 128, %s169_s24, %s157_s27  }
  0x27   : > { %177 = sbr.rel (%p706_p8) target bundleno = 117 (0x75), region = 32  ;;  %s759_s9 = sand.u32 (!%p706_p8), 1, %s629_s13  }
  0x28   : > { %s393_s17 = sshll.u32 (!%p706_p8), %s759_s9, 3  ;;  %s180_s20 = scalar_lea.sflag (!%p706_p8), [#allocation3], %s759_s9 }
  0x29   : > { %s183_s21 = scalar_lea.vmem (!%p706_p8), [#allocation2], %s393_s17 }
  0x2c   : > { %612 = dma.done.wait (%p693_p4), %s180_s20, 128  }
  0x2d   : > { %614 = vsyncadd (%p693_p4), %s180_s20, 4294967168 }
  0x2e   : > { %616 = dma.done.wait (%p41_p1), [#allocation6], 64  }
  0x2f   : > { %618 = vsyncadd (%p41_p1), [#allocation6], 4294967232  ;;  %v641_v0 = vmov 8.0   ;;  %v218_v2 = vld [vmem:[%s183_s21] sm:$0xff]  ;;  %v642_v7 = vmov 7.0   ;;  %s397_s18 = sshll.u32 %s684_s16, 7 }
  0x30   : > { %471 = vrcp.f32 %v641_v0  ;;  %v219_v3 = vrot.slane %v218_v2, 4  ;;  %s260_s23 = sshra.s32 %s397_s18, 7  ;;  %s399_s24 = sshll.u32 %s684_s16, 3 }
  0x31   : > { %473 = vrcp.f32 %v642_v7  ;;  %s262_s22 = scalar_lea.vmem [#allocation5], %s260_s23  ;;  %s264_s25 = scalar_lea.vmem [#allocation7], %s260_s23 }
  0x32   : > { %v220_v5 = vadd.f32 %v219_v3, %v218_v2  ;;  %v263_v38 = vld [vmem:[%s262_s22] sm:$0x1]  ;;  %s289_s28 = scalar_lea.hbm %s812_s3, %s399_s24  ;;  %s216_s29 = scalar_lea.vmem [#allocation8], %s393_s17 }
  0x33   : > { %v265_v41 = vld [vmem:[%s264_s25] sm:$0x1]  ;;  %s291_s30 = sshll.u32 %s216_s29, 4  ;;  %s293_s5 = sshll.u32 %s289_s28, 4  ;;  %s292_s30 = int_to_ptr.vmem [resolvable:$true] %s291_s30  ;;  %s294_s5 = int_to_ptr.hbm [resolvable:$true] %s293_s5 }
  0x34   : > { %v221_v8 = vrot.slane %v220_v5, 2  ;;  %s279_s16 = scalar_lea.sflag [#allocation4], %s759_s9  ;;  %s581_s6 = sshra.s32 %s294_s5, 4  ;;  %s582_s6 = int_to_ptr.hbm [resolvable:$true] %s581_s6 }
  0x35   : > { %s583_s10 = scalar_lea.hbm %s582_s6, 8  ;;  %s587_s21 = scalar_lea.hbm %s812_s3, 16 }
  0x36   : > { %v472_v1 = vpop.eup %471  ;;  %v222_v10 = vadd.f32 %v221_v8, %v220_v5  ;;  %p584_p1 = scmp.ne.s32.totalorder %s582_s6, %s583_s10  ;;  %p588_p9 = scmp.lt.s32.totalorder %s582_s6, %s812_s3 }
  0x37   : > { %v226_v4 = vmul.f32 8.0, %v472_v1  ;;  %vm230_vm0 = vweird.f32 %v472_v1  ;;  %v474_v12 = vpop.eup %473  ;;  %p589_p2 = scmp.lt.s32.totalorder %s587_s21, %s583_s10 }
  0x38   : > { %v223_v13 = vrot.slane %v222_v10, 1  ;;  %v242_v16 = vmul.f32 7.0, %v474_v12  ;;  %vm246_vm1 = vweird.f32 %v474_v12  ;;  %p585_p4 = pnand %p584_p1, %p729_p3 }
  0x39   : > { %v227_v6 = vsub.f32 1.0, %v226_v4  ;;  %p590_p10 = por %p589_p2, %p588_p9 }
  0x3a   : > { %v224_v15 = vadd.f32 %v223_v13, %v222_v10  ;;  %v243_v19 = vsub.f32 1.0, %v242_v16  ;;  %p586_p8 = pneg %p585_p4 }
  0x3b   : > { %v228_v9 = vmul.f32 %v472_v1, %v227_v6 }
  0x3c   : > { %v244_v22 = vmul.f32 %v474_v12, %v243_v19  ;;  %p591_p11 = pnand %p590_p10, %p586_p8 }
  0x3d   : > { %v229_v11 = vadd.f32 %v472_v1, %v228_v9 }
  0x3e   : > { %v245_v25 = vadd.f32 %v474_v12, %v244_v22 }
  0x3f   : > { %v231_v14 = vsel %vm230_vm0, %v472_v1, %v229_v11 }
  0x40   : > { %v232_v17 = vmul.f32 %v231_v14, %v224_v15  ;;  %v247_v28 = vsel %vm246_vm1, %v474_v12, %v245_v25 }
  0x42   : > { %v233_v18 = vsub.f32 %v218_v2, %v232_v17 }
  0x44   : > { %v234_v20 = vmul.f32 %v233_v18, %v233_v18 }
  0x46   : > { %v235_v21 = vrot.slane %v234_v20, 4 }
  0x48   : > { %v236_v23 = vadd.f32 %v235_v21, %v234_v20 }
  0x4a   : > { %v237_v24 = vrot.slane %v236_v23, 2 }
  0x4c   : > { %v238_v26 = vadd.f32 %v237_v24, %v236_v23 }
  0x4e   : > { %v239_v27 = vrot.slane %v238_v26, 1 }
  0x50   : > { %v240_v29 = vadd.f32 %v239_v27, %v238_v26 }
  0x52   : > { %v248_v30 = vmul.f32 %v247_v28, %v240_v29 }
  0x54   : > { %v249_v31 = vadd.f32 1e-10, %v248_v30 }
  0x56   : > { %475 = vrsqrt.f32 %v249_v31  ;;  %vm256_vm2 = vweird.f32 %v249_v31 }
  0x5c   : > { %v476_v32 = vpop.eup %475 }
  0x5d   : > { %v251_v33 = vmul.f32 %v476_v32, %v249_v31  ;;  %vm257_vm3 = vweird.f32 %v476_v32 }
  0x5e   : > { %vm258_vm4 = vmor %vm256_vm2, %vm257_vm3 }
  0x5f   : > { %v252_v34 = vmul.f32 %v476_v32, %v251_v33 }
  0x61   : > { %v253_v35 = vmul.f32 0.5, %v252_v34 }
  0x63   : > { %v254_v36 = vsub.f32 1.5, %v253_v35 }
  0x65   : > { %v255_v37 = vmul.f32 %v476_v32, %v254_v36 }
  0x67   : > { %v259_v39 = vsel %vm258_vm4, %v476_v32, %v255_v37 }
  0x68   : > { %v266_v40 = vmul.f32 %v263_v38, %v259_v39 }
  0x6a   : > { %v267_v42 = vmul.f32 %v266_v40, %v232_v17  ;;  %v270_v43 = vperm.slane %v266_v40, 0 }
  0x6c   : > { %v268_v44 = vsub.f32 %v265_v41, %v267_v42  ;;  %v272_v45 = vmul.f32 %v270_v43, %v218_v2 }
  0x6e   : > { %v274_v46 = vperm.slane %v268_v44, 0 }
  0x70   : > { %v276_v47 = vadd.f32 %v274_v46, %v272_v45 }
  0x72   : > { %277 = vst [vmem:[%s216_s29] sm:$0xff] %v276_v47 }
  0x73   : > { %594 = shalt.err (!%p591_p11)
}
  0x74   : > { %412 = dma.vmem_to_hbm [thread:$0]  (%p729_p3), %s292_s30, 128, %s294_s5, %s279_s16  }
  0x75 PF: > { %s305_s9 = sand.u32 1, %s625_s12   ;;  %p818_p12 = scmp.ge.s32.totalorder %s637_s15, 2 }
  0x76   : > { %s306_s23 = scalar_lea.sflag [#allocation4], %s305_s9 }
  0x77   : > { %p426_p13 = pnand %p818_p12, %p698_p6 }
  0x79   : > { %p427_p0 = pneg %p426_p13 }
  0x7b   : > { %620 = dma.done.wait (%p427_p0), %s306_s23, 128  }
  0x7c   : > { %622 = vsyncadd (%p427_p0), %s306_s23, 4294967168  ;;  %p17_p5 = scmp.ge.s32.totalorder %s719_s4, 4   ;;  %s819_s12 = smov %s629_s13 }
  0x7d   : > { %s820_s13 = smov %s633_s14  ;;  %s821_s14 = smov %s735_s8 }
  0x7e   : > { %s822_s15 = smov %s719_s4  ;;  %19 = sbr.rel (!%p17_p5) target bundleno = 6 (0x6), region = 87 }
  0x83   :  { %312 = vsyncpa [#allocation3], 1 }
  0x84   :  { %314 = vsyncpa [#allocation3 + $0x1], 1 }
  0x85   :  { %315 = vsyncpa [#allocation6], 1 }
  0x86   :  { %316 = vsyncpa [#allocation4], 1 }
  0x87   :  { %318 = vsyncpa [#allocation4 + $0x1], 1 }

</bundles_post_ra>
